<compile_context>
chip_gen: v5e
topology: v5e:2x2
jax: 0.10.0
libtpu: 0.0.40
codegen_flags: <defaults>
</compile_context>

<pallas_src>
import functools

import jax
import jax.numpy as jnp
import numpy as np
from jax.experimental import pallas as pl
from jax.experimental.pallas import tpu as pltpu


# ----------------------------------------------------------------------------
# Helpers
# ----------------------------------------------------------------------------
def _freq_mean_bcast(aux, F, T):
    """(1/F) * sum_{j=0}^{F-1} roll(aux, j*T, lanes): O(log F) modular roll tree.

    Because the lane axis is F*T, rolling by j*T cyclically shifts the frequency
    index (mod F) while keeping the time residue, so every lane ends up holding
    the frequency-mean for its own time step, already broadcast over F.
    """
    FT = aux.shape[-1]
    total = None
    acc = aux            # sums rolls by offsets {0, ..., covered-1} * T
    covered = 1
    done = 0             # offsets {0, ..., done-1} already folded into `total`
    rem = F
    while True:
        if rem & 1:
            if done == 0:
                part = acc
            else:
                part = pltpu.roll(acc, (done * T) % FT, axis=1)
            total = part if total is None else total + part
            done += covered
        rem >>= 1
        if rem == 0:
            break
        acc = acc + pltpu.roll(acc, (covered * T) % FT, axis=1)
        covered *= 2
    return total * (1.0 / F)


# ----------------------------------------------------------------------------
# Pallas kernel: single invocation, whole batch as one (N*C, F*T) slab.
# ----------------------------------------------------------------------------
def bc_block_kernel(x_ref, m_ref, wblk_ref, o_ref, *, F, T):
    x = x_ref[...].astype(jnp.float32)            # (N*C, F*T), lane-dense
    FT = x.shape[-1]

    # --- freq_dw_conv (3,1), pad (1,0) + ssn1 affine -------------------------
    # Frequency shifts are lane rolls by T; the zero padding at f==0 / f==F-1
    # is folded into m[0]/m[2] (those lanes carry tap weight 0), so the roll
    # wrap-around can never leak data.
    x_up = pltpu.roll(x, T, axis=1)               # x[f-1, t]
    x_dn = pltpu.roll(x, FT - T, axis=1)          # x[f+1, t]
    aux = (m_ref[0] * x_up + m_ref[1] * x + m_ref[2] * x_dn
           + m_ref[3])                            # aux = ssn1(freq_dw_conv(x))

    # --- mean over frequency (broadcast over all F lanes) --------------------
    y = _freq_mean_bcast(aux, F, T)               # (N*C, F*T), constant over f

    # --- temp_dw_conv (1,3), pad (0,1) + bn affine + ReLU --------------------
    # Time shifts are lane rolls by 1; edge zero padding folded into m[4]/m[6].
    y_l = pltpu.roll(y, 1, axis=1)                # y[t-1]
    y_r = pltpu.roll(y, FT - 1, axis=1)           # y[t+1]
    z = m_ref[4] * y_l + m_ref[5] * y + m_ref[6] * y_r + m_ref[7]
    z = jnp.maximum(z, 0.0)                       # self.swish == nn.ReLU

    # --- conv1x1: block-diagonal channel mix on the (otherwise idle) MXU -----
    # wblk is kron(eye(N), w1x1): mix[n*C+o] = sum_c w1x1[o, c] * z[n*C+c].
    mix = jnp.dot(wblk_ref[...], z,
                  preferred_element_type=jnp.float32,
                  precision=jax.lax.Precision.HIGHEST)

    # --- residual adds + final ReLU ------------------------------------------
    o_ref[...] = jnp.maximum(mix + aux + x, 0.0).astype(o_ref.dtype)


# ----------------------------------------------------------------------------
# One-time parameter folding (hoisted out of the per-call path).
# ----------------------------------------------------------------------------
def fold_params(N, C, F, T, w_freq, ssn_scale, ssn_shift, w_temp,
                bn_scale, bn_shift, w1x1, dtype=jnp.float32):
    """Fold conv taps + eval-mode norm affines into lane-dense maps.

    Returns
      maps : (8, N*C, F*T)  [a0, a1, a2, ssn_shift, b0, b1, b2, bn_shift]
      wblk : (N*C, N*C)     block-diagonal conv1x1 weight (kron(eye(N), w1x1))
    # TODO(synk): on v6e/v7x these could be stored in bf16 to halve DMA bytes
    # (not on v5e: no native bf16 VALU path).
    """
    FT = F * T

    # Edge masks folded into the taps (kills the roll wrap-around exactly).
    fmask_lo = (jnp.arange(F) > 0).astype(dtype)      # no f-1 contribution at f==0
    fmask_hi = (jnp.arange(F) < F - 1).astype(dtype)  # no f+1 contribution at f==F-1
    a0 = ssn_scale * w_freq[0][:, None] * fmask_lo[None, :]        # (C, F)
    a1 = ssn_scale * w_freq[1][:, None]
    a2 = ssn_scale * w_freq[2][:, None] * fmask_hi[None, :]
    ss = ssn_shift                                                  # (C, F)

    tmask_lo = (jnp.arange(T) > 0).astype(dtype)
    tmask_hi = (jnp.arange(T) < T - 1).astype(dtype)
    b0 = (bn_scale * w_temp[0])[:, None] * tmask_lo[None, :]       # (C, T)
    b1 = jnp.broadcast_to((bn_scale * w_temp[1])[:, None], (C, T))
    b2 = (bn_scale * w_temp[2])[:, None] * tmask_hi[None, :]
    bs = jnp.broadcast_to(bn_shift[:, None], (C, T))

    def cf(p):   # (C, F) -> (N*C, F*T): constant over t in each F block, tiled over N
        return jnp.tile(jnp.broadcast_to(p[:, :, None], (C, F, T)).reshape(C, FT),
                        (N, 1))

    def ct(p):   # (C, T) -> (N*C, F*T): repeated for every F block, tiled over N
        return jnp.tile(jnp.broadcast_to(p[:, None, :], (C, F, T)).reshape(C, FT),
                        (N, 1))

    maps = jnp.stack([cf(a0), cf(a1), cf(a2), cf(ss),
                      ct(b0), ct(b1), ct(b2), ct(bs)], axis=0).astype(dtype)
    wblk = jnp.kron(jnp.eye(N, dtype=dtype), w1x1.astype(dtype))
    return maps, wblk


# ----------------------------------------------------------------------------
# Per-call wrapper: reshape + one grid-less pallas_call.
# ----------------------------------------------------------------------------
@jax.jit
def bc_block(x, maps, wblk):
    N, C, F, T = x.shape
    NC, FT = N * C, F * T
    x2 = x.reshape(NC, FT)                        # lane-dense, full sublanes

    kernel = functools.partial(bc_block_kernel, F=F, T=T)
    out2 = pl.pallas_call(
        kernel,
        out_shape=jax.ShapeDtypeStruct((NC, FT), x.dtype),
    )(x2, maps, wblk)
    return out2.reshape(N, C, F, T)


# ----------------------------------------------------------------------------
# Pure-JAX reference (unfused math, PyTorch forward order) for correctness.
# ----------------------------------------------------------------------------
def reference(x, w_freq, ssn_scale, ssn_shift, w_temp, bn_scale, bn_shift, w1x1):
    hp = jax.lax.Precision.HIGHEST
    wf = w_freq[:, None, :, None, None]              # (3,1,C,1,1)
    wt = w_temp[:, None, :, None, None]

    xp = jnp.pad(x, ((0, 0), (0, 0), (1, 1), (0, 0)))
    out = (wf[0] * xp[:, :, :-2, :] + wf[1] * xp[:, :, 1:-1, :]
           + wf[2] * xp[:, :, 2:, :])
    out = out * ssn_scale[None, :, :, None] + ssn_shift[None, :, :, None]
    aux = out
    y = out.mean(axis=2, keepdims=True)
    yp = jnp.pad(y, ((0, 0), (0, 0), (0, 0), (1, 1)))
    y = wt[0] * yp[..., :-2] + wt[1] * yp[..., 1:-1] + wt[2] * yp[..., 2:]
    y = y * bn_scale[None, :, None, None] + bn_shift[None, :, None, None]
    y = jnp.maximum(y, 0.0)
    y = jnp.einsum('oc,ncft->noft', w1x1, y, precision=hp)
    out = y + aux
    out = out + x
    return jnp.maximum(out, 0.0)


# ----------------------------------------------------------------------------
# Deterministic parameter construction mirroring the PyTorch module shapes.
# ----------------------------------------------------------------------------
def make_params(key, C, F, S):
    eps = 1e-5
    ks = jax.random.split(key, 10)

    # freq_dw_conv.weight : (C, 1, 3, 1) -> taps (3, C)
    wf_t = jax.random.normal(ks[0], (C, 1, 3, 1), jnp.float32) * 0.5
    w_freq = jnp.transpose(wf_t[:, 0, :, 0], (1, 0))

    # temp_dw_conv.weight : (C, 1, 1, 3) -> taps (3, C)
    wt_t = jax.random.normal(ks[1], (C, 1, 1, 3), jnp.float32) * 0.5
    w_temp = jnp.transpose(wt_t[:, 0, 0, :], (1, 0))

    # conv1x1.weight : (C, C, 1, 1) -> (C_out, C_in)
    w1x1 = jax.random.normal(ks[2], (C, C, 1, 1), jnp.float32)[:, :, 0, 0] * 0.3

    # ssn1.bn : BatchNorm2d(C*S), eval-mode running stats folded per (c, f).
    g_cs = 1.0 + 0.1 * jax.random.normal(ks[3], (C * S,), jnp.float32)
    b_cs = 0.1 * jax.random.normal(ks[4], (C * S,), jnp.float32)
    m_cs = 0.1 * jax.random.normal(ks[5], (C * S,), jnp.float32)
    v_cs = 0.5 + jnp.abs(jax.random.normal(ks[6], (C * S,), jnp.float32))
    scale_cs = g_cs / jnp.sqrt(v_cs + eps)
    shift_cs = b_cs - m_cs * scale_cs
    ssn_scale = jnp.repeat(scale_cs.reshape(C, S), F // S, axis=1)   # (C, F)
    ssn_shift = jnp.repeat(shift_cs.reshape(C, S), F // S, axis=1)   # (C, F)

    # bn : BatchNorm2d(C), eval-mode running stats folded per channel.
    g_c = 1.0 + 0.1 * jax.random.normal(ks[7], (C,), jnp.float32)
    b_c = 0.1 * jax.random.normal(ks[8], (C,), jnp.float32)
    m_c = 0.1 * jax.random.normal(ks[9], (C,), jnp.float32)
    v_c = jnp.ones((C,), jnp.float32)
    bn_scale = g_c / jnp.sqrt(v_c + eps)                             # (C,)
    bn_shift = b_c - m_c * bn_scale                                  # (C,)

    return w_freq, ssn_scale, ssn_shift, w_temp, bn_scale, bn_shift, w1x1


if __name__ == "__main__":
    N, C, F, T = 2, 4, 16, 16      # batch, planes, freq, time  (N*C = 8 sublanes,
    S = 4                          #  F*T = 256 lanes); sub-bands, F % S == 0

    key = jax.random.PRNGKey(0)
    kx, kp = jax.random.split(key)
    x = jax.random.normal(kx, (N, C, F, T), jnp.float32)
    params = make_params(kp, C, F, S)

    # Fold params ONCE at "model load" time (hoisted out of the per-call path).
    maps, wblk = fold_params(N, C, F, T, *params)
    maps, wblk = jax.block_until_ready((maps, wblk))

    out = bc_block(x, maps, wblk)
    out = jax.block_until_ready(out)

    ref = reference(x, *params)
    np.testing.assert_allclose(np.asarray(out), np.asarray(ref),
                               rtol=1e-5, atol=1e-5)
    print("KERNEL_OK")
</pallas_src>

<mosaic_0001>
module attributes {stable_mosaic.version = 11 : i64} {
  func.func @bc_block_kernel(%arg0: memref<8x256xf32, #tpu.memory_space<vmem>>, %arg1: memref<8x8x256xf32, #tpu.memory_space<vmem>>, %arg2: memref<8x8xf32, #tpu.memory_space<vmem>>, %arg3: memref<8x256xf32, #tpu.memory_space<vmem>>) attributes {dimension_semantics = [], scalar_prefetch = 0 : i64, scratch_operands = 0 : i64, tpu.core_type = #tpu.core_type<tc>} {
    %c0 = arith.constant 0 : index
    %c0_0 = arith.constant 0 : index
    %0 = vector.load %arg0[%c0, %c0_0] : memref<8x256xf32, #tpu.memory_space<vmem>>, vector<8x256xf32>
    %c16_i32 = arith.constant 16 : i32
    %1 = tpu.dynamic_rotate %0 by %c16_i32 dim 1 : vector<8x256xf32>, i32 -> vector<8x256xf32>
    %c240_i32 = arith.constant 240 : i32
    %2 = tpu.dynamic_rotate %0 by %c240_i32 dim 1 : vector<8x256xf32>, i32 -> vector<8x256xf32>
    %c0_1 = arith.constant 0 : index
    %c0_2 = arith.constant 0 : index
    %c0_3 = arith.constant 0 : index
    %3 = vector.load %arg1[%c0_1, %c0_2, %c0_3] : memref<8x8x256xf32, #tpu.memory_space<vmem>>, vector<1x8x256xf32>
    %4 = vector.shape_cast %3 : vector<1x8x256xf32> to vector<8x256xf32>
    %5 = arith.mulf %4, %1 : vector<8x256xf32>
    %c1 = arith.constant 1 : index
    %c0_4 = arith.constant 0 : index
    %c0_5 = arith.constant 0 : index
    %6 = vector.load %arg1[%c1, %c0_4, %c0_5] : memref<8x8x256xf32, #tpu.memory_space<vmem>>, vector<1x8x256xf32>
    %7 = vector.shape_cast %6 : vector<1x8x256xf32> to vector<8x256xf32>
    %8 = arith.mulf %7, %0 : vector<8x256xf32>
    %9 = arith.addf %5, %8 : vector<8x256xf32>
    %c2 = arith.constant 2 : index
    %c0_6 = arith.constant 0 : index
    %c0_7 = arith.constant 0 : index
    %10 = vector.load %arg1[%c2, %c0_6, %c0_7] : memref<8x8x256xf32, #tpu.memory_space<vmem>>, vector<1x8x256xf32>
    %11 = vector.shape_cast %10 : vector<1x8x256xf32> to vector<8x256xf32>
    %12 = arith.mulf %11, %2 : vector<8x256xf32>
    %13 = arith.addf %9, %12 : vector<8x256xf32>
    %c3 = arith.constant 3 : index
    %c0_8 = arith.constant 0 : index
    %c0_9 = arith.constant 0 : index
    %14 = vector.load %arg1[%c3, %c0_8, %c0_9] : memref<8x8x256xf32, #tpu.memory_space<vmem>>, vector<1x8x256xf32>
    %15 = vector.shape_cast %14 : vector<1x8x256xf32> to vector<8x256xf32>
    %16 = arith.addf %13, %15 : vector<8x256xf32>
    %c16_i32_10 = arith.constant 16 : i32
    %17 = tpu.dynamic_rotate %16 by %c16_i32_10 dim 1 : vector<8x256xf32>, i32 -> vector<8x256xf32>
    %18 = arith.addf %16, %17 : vector<8x256xf32>
    %c32_i32 = arith.constant 32 : i32
    %19 = tpu.dynamic_rotate %18 by %c32_i32 dim 1 : vector<8x256xf32>, i32 -> vector<8x256xf32>
    %20 = arith.addf %18, %19 : vector<8x256xf32>
    %c64_i32 = arith.constant 64 : i32
    %21 = tpu.dynamic_rotate %20 by %c64_i32 dim 1 : vector<8x256xf32>, i32 -> vector<8x256xf32>
    %22 = arith.addf %20, %21 : vector<8x256xf32>
    %c128_i32 = arith.constant 128 : i32
    %23 = tpu.dynamic_rotate %22 by %c128_i32 dim 1 : vector<8x256xf32>, i32 -> vector<8x256xf32>
    %24 = arith.addf %22, %23 : vector<8x256xf32>
    %cst = arith.constant 6.250000e-02 : f32
    %25 = vector.broadcast %cst : f32 to vector<8x256xf32>
    %26 = arith.mulf %24, %25 : vector<8x256xf32>
    %c1_i32 = arith.constant 1 : i32
    %27 = tpu.dynamic_rotate %26 by %c1_i32 dim 1 : vector<8x256xf32>, i32 -> vector<8x256xf32>
    %c255_i32 = arith.constant 255 : i32
    %28 = tpu.dynamic_rotate %26 by %c255_i32 dim 1 : vector<8x256xf32>, i32 -> vector<8x256xf32>
    %c4 = arith.constant 4 : index
    %c0_11 = arith.constant 0 : index
    %c0_12 = arith.constant 0 : index
    %29 = vector.load %arg1[%c4, %c0_11, %c0_12] : memref<8x8x256xf32, #tpu.memory_space<vmem>>, vector<1x8x256xf32>
    %30 = vector.shape_cast %29 : vector<1x8x256xf32> to vector<8x256xf32>
    %31 = arith.mulf %30, %27 : vector<8x256xf32>
    %c5 = arith.constant 5 : index
    %c0_13 = arith.constant 0 : index
    %c0_14 = arith.constant 0 : index
    %32 = vector.load %arg1[%c5, %c0_13, %c0_14] : memref<8x8x256xf32, #tpu.memory_space<vmem>>, vector<1x8x256xf32>
    %33 = vector.shape_cast %32 : vector<1x8x256xf32> to vector<8x256xf32>
    %34 = arith.mulf %33, %26 : vector<8x256xf32>
    %35 = arith.addf %31, %34 : vector<8x256xf32>
    %c6 = arith.constant 6 : index
    %c0_15 = arith.constant 0 : index
    %c0_16 = arith.constant 0 : index
    %36 = vector.load %arg1[%c6, %c0_15, %c0_16] : memref<8x8x256xf32, #tpu.memory_space<vmem>>, vector<1x8x256xf32>
    %37 = vector.shape_cast %36 : vector<1x8x256xf32> to vector<8x256xf32>
    %38 = arith.mulf %37, %28 : vector<8x256xf32>
    %39 = arith.addf %35, %38 : vector<8x256xf32>
    %c7 = arith.constant 7 : index
    %c0_17 = arith.constant 0 : index
    %c0_18 = arith.constant 0 : index
    %40 = vector.load %arg1[%c7, %c0_17, %c0_18] : memref<8x8x256xf32, #tpu.memory_space<vmem>>, vector<1x8x256xf32>
    %41 = vector.shape_cast %40 : vector<1x8x256xf32> to vector<8x256xf32>
    %42 = arith.addf %39, %41 : vector<8x256xf32>
    %cst_19 = arith.constant 0.000000e+00 : f32
    %43 = vector.broadcast %cst_19 : f32 to vector<8x256xf32>
    %44 = arith.maximumf %42, %43 : vector<8x256xf32>
    %c0_20 = arith.constant 0 : index
    %c0_21 = arith.constant 0 : index
    %45 = vector.load %arg2[%c0_20, %c0_21] : memref<8x8xf32, #tpu.memory_space<vmem>>, vector<8x8xf32>
    %cst_22 = arith.constant dense<0.000000e+00> : vector<8x256xf32>
    %46 = tpu.matmul %45, %44, %cst_22 {dimension_numbers = #tpu.dot_dimension_numbers<[1], [0], [0], [1], [0, 0, 1, 1], [], []>, precision = #tpu.contract_precision<fp32>} : vector<8x8xf32>, vector<8x256xf32>, vector<8x256xf32> -> vector<8x256xf32>
    %47 = arith.addf %46, %16 : vector<8x256xf32>
    %48 = arith.addf %47, %0 : vector<8x256xf32>
    %cst_23 = arith.constant 0.000000e+00 : f32
    %49 = vector.broadcast %cst_23 : f32 to vector<8x256xf32>
    %50 = arith.maximumf %48, %49 : vector<8x256xf32>
    %c0_24 = arith.constant 0 : index
    %c0_25 = arith.constant 0 : index
    %51 = vector.load %arg3[%c0_24, %c0_25] : memref<8x256xf32, #tpu.memory_space<vmem>>, vector<8x256xf32>
    tpu.vector_store %arg3[%c0_24, %c0_25], %50 {strides = array<i32>} : memref<8x256xf32, #tpu.memory_space<vmem>>, vector<8x256xf32>,
    return
  }
}

</mosaic_0001>

<bundles_post_ra>
// kernel: bc_block.1
= control target key start
LH: loop header
LB: loop body
LE: loop exit
PB: predicated region body
PF: predicated region fallthrough
CT: control target
= control target key end

     0   :  { %s440_s14 = smov 112   ;;  %s441_s15 = smov 16   ;;  %v20_v2 = vlaneseq  ;;  %vm114_vm4 = vcmask 64512   ;;  %s561_s0 = inlined_call_operand.vmem [shape: f32[8,256], index: 0, kind: input, shape index: {}]   ;;  %s562_s1 = inlined_call_operand.vmem [shape: f32[8,8,256], index: 1, kind: input, shape index: {}]   ;;  %s563_s2 = inlined_call_operand.vmem [shape: f32[8,8], index: 2, kind: input, shape index: {}]   ;;  %s564_s3 = inlined_call_operand.vmem [shape: f32[8,256], index: 3, kind: output, shape index: {}]  }
   0x1   :  { %v469_v0 = vld [vmem:[%s561_s0] sm:$0xff]  ;;  %v477_v1 = vld [vmem:[%s561_s0 + $0x8] sm:$0xff]  ;;  %v420_v6 = vld [vmem:[%s562_s1 + $0x10] sm:$0xff]  ;;  %s442_s6 = smov 32   ;;  %s443_s7 = smov 64  }
   0x2   :  { %25 = vrot.lane.b32.xlu1 %v469_v0, %s440_s14  ;;  %16 = vrot.lane.b32.xlu0 %v469_v0, %s441_s15  ;;  %v21_v5 = vand.u32 127, %v20_v2  ;;  %v32_v7 = vld [vmem:[%s562_s1] sm:$0xff]  ;;  %v39_v10 = vmul.f32 %v420_v6, %v469_v0  ;;  %v33_v13 = vld [vmem:[%s562_s1 + $0x8] sm:$0xff]  ;;  %s444_s8 = smov 127   ;;  %s445_s9 = smov 1  }
   0x3   :  { %v422_v11 = vld [vmem:[%s562_s1 + $0x20] sm:$0xff]  ;;  %v421_v14 = vld [vmem:[%s562_s1 + $0x18] sm:$0xff]  ;;  %v424_v22 = vld [vmem:[%s562_s1 + $0x30] sm:$0xff] }
   0x4   :  { %vm29_vm0 = vcmp.lt.s32.totalorder %v21_v5, 112  ;;  %vm22_vm1 = vcmp.lt.s32.totalorder %v21_v5, 16  ;;  %v40_v19 = vmul.f32 %v421_v14, %v477_v1  ;;  %v423_v24 = vld [vmem:[%s562_s1 + $0x28] sm:$0xff]  ;;  %v425_v30 = vld [vmem:[%s562_s1 + $0x38] sm:$0xff]  ;;  %vm67_vm2 = vcmp.lt.s32.totalorder %v21_v5, 32  ;;  %v113_v52 = vld [vmem:[%s563_s2] sm:$0xff] }
   0x5   :  { %vm76_vm3 = vcmp.lt.s32.totalorder %v21_v5, 64  ;;  %v116_v53 = vsel %vm114_vm4, %v113_v52, 0  ;;  %v428_v55 = vld [vmem:[%s562_s1 + $0x50] sm:$0xff]  ;;  %v426_v56 = vld [vmem:[%s562_s1 + $0x40] sm:$0xff]  ;;  %v427_v57 = vld [vmem:[%s562_s1 + $0x48] sm:$0xff] }
   0x6   :  { %v135_v54 = vand.u32 4294901760, %v116_v53  ;;  %v429_v58 = vld [vmem:[%s562_s1 + $0x58] sm:$0xff]  ;;  %v430_v60 = vld [vmem:[%s562_s1 + $0x60] sm:$0xff]  ;;  %v431_v61 = vld [vmem:[%s562_s1 + $0x68] sm:$0xff] }
   0x8   :  { %v136_v59 = vsub.f32 %v116_v53, %v135_v54 }
   0xa   :  { %27 = vrot.lane.b32.xlu1 %v477_v1, %s440_s14  ;;  %18 = vrot.lane.b32.xlu0 %v477_v1, %s441_s15  ;;  %v137_v6 = vand.u32 4294901760, %v136_v59 }
  0x74   :  { %v26_v3 = vpop.permute.xlu1 %25  ;;  %v17_v4 = vpop.permute.xlu0 %16 }
  0x7c   :  { %v28_v8 = vpop.permute.xlu1 %27  ;;  %v19_v9 = vpop.permute.xlu0 %18 }
  0x7d   :  { %v30_v12 = vsel %vm29_vm0, %v26_v3, %v28_v8  ;;  %v23_v15 = vsel %vm22_vm1, %v17_v4, %v19_v9  ;;  %v24_v16 = vsel %vm22_vm1, %v19_v9, %v17_v4  ;;  %v31_v25 = vsel %vm29_vm0, %v28_v8, %v26_v3 }
  0x7e   :  { %v34_v17 = vmul.f32 %v32_v7, %v24_v16  ;;  %v46_v18 = vmul.f32 %v422_v11, %v30_v12  ;;  %v35_v20 = vmul.f32 %v33_v13, %v23_v15  ;;  %v47_v28 = vmul.f32 %v423_v24, %v31_v25  ;;  %v432_v11 = vld [vmem:[%s562_s1 + $0x70] sm:$0xff]  ;;  %v433_v12 = vld [vmem:[%s562_s1 + $0x78] sm:$0xff] }
  0x7f   :  { %v138_v15 = vsub.f32 %v136_v59, %v137_v6 }
  0x80   :  { %v41_v21 = vadd.f32 %v39_v10, %v34_v17  ;;  %v42_v26 = vadd.f32 %v40_v19, %v35_v20 }
  0x81   :  { %v139_v20 = vand.u32 4294901760, %v138_v15 }
  0x82   :  { %v48_v23 = vadd.f32 %v46_v18, %v41_v21  ;;  %v49_v29 = vadd.f32 %v47_v28, %v42_v26 }
  0x84   :  { %v509_v27 = vadd.f32 %v424_v22, %v48_v23  ;;  %v516_v31 = vadd.f32 %v425_v30, %v49_v29 }
  0x86   :  { %55 = vrot.lane.b32.xlu2 %v509_v27, %s441_s15 }
  0x8e   :  { %57 = vrot.lane.b32.xlu2 %v516_v31, %s441_s15 }
  0xe0   :  { %v56_v32 = vpop.permute.xlu2 %55 }
  0xe8   :  { %v58_v33 = vpop.permute.xlu2 %57 }
  0xe9   :  { %v59_v34 = vsel %vm22_vm1, %v56_v32, %v58_v33  ;;  %v60_v35 = vsel %vm22_vm1, %v58_v33, %v56_v32 }
  0xea   :  { %v61_v36 = vadd.f32 %v60_v35, %v509_v27  ;;  %v62_v37 = vadd.f32 %v59_v34, %v516_v31 }
  0xec   :  { %63 = vrot.lane.b32.xlu0 %v61_v36, %s442_s6  ;;  %65 = vrot.lane.b32.xlu1 %v62_v37, %s442_s6 }
 0x15e   :  { %v64_v38 = vpop.permute.xlu0 %63  ;;  %v66_v39 = vpop.permute.xlu1 %65 }
 0x15f   :  { %v68_v40 = vsel %vm67_vm2, %v64_v38, %v66_v39  ;;  %v69_v41 = vsel %vm67_vm2, %v66_v39, %v64_v38 }
 0x160   :  { %v70_v42 = vadd.f32 %v69_v41, %v61_v36  ;;  %v71_v43 = vadd.f32 %v68_v40, %v62_v37 }
 0x162   :  { %72 = vrot.lane.b32.xlu2 %v70_v42, %s443_s7  ;;  %74 = vrot.lane.b32.xlu0 %v71_v43, %s443_s7 }
 0x1bc   :  { %v73_v44 = vpop.permute.xlu2 %72 }
 0x1d4   :  { %v75_v45 = vpop.permute.xlu0 %74 }
 0x1d5   :  { %v77_v46 = vsel %vm76_vm3, %v73_v44, %v75_v45  ;;  %v78_v47 = vsel %vm76_vm3, %v75_v45, %v73_v44 }
 0x1d6   :  { %v79_v48 = vadd.f32 %v78_v47, %v70_v42  ;;  %v80_v49 = vadd.f32 %v77_v46, %v71_v43 }
 0x1d8   :  { %v81_v50 = vadd.f32 %v80_v49, %v79_v48 }
 0x1da   :  { %v82_v51 = vmul.f32 0.0625, %v81_v50 }
 0x1dc   :  { %85 = vrot.lane.b32.xlu2 %v82_v51, %s444_s8  ;;  %83 = vrot.lane.b32.xlu1 %v82_v51, %s445_s9  ;;  %v95_v4 = vmul.f32 %v428_v55, %v82_v51  ;;  %v96_v5 = vmul.f32 %v429_v58, %v82_v51 }
 0x236   :  { %v86_v62 = vpop.permute.xlu2 %85 }
 0x237   :  { %v102_v7 = vmul.f32 %v430_v60, %v86_v62  ;;  %v103_v8 = vmul.f32 %v431_v61, %v86_v62 }
 0x24e   :  { %v84_v63 = vpop.permute.xlu1 %83 }
 0x24f   :  { %v90_v2 = vmul.f32 %v426_v56, %v84_v63  ;;  %v91_v3 = vmul.f32 %v427_v57, %v84_v63 }
 0x251   :  { %v97_v9 = vadd.f32 %v95_v4, %v90_v2  ;;  %v98_v10 = vadd.f32 %v96_v5, %v91_v3 }
 0x253   :  { %v104_v13 = vadd.f32 %v102_v7, %v97_v9  ;;  %v105_v14 = vadd.f32 %v103_v8, %v98_v10 }
 0x255   :  { %v109_v16 = vadd.f32 %v432_v11, %v104_v13  ;;  %v110_v17 = vadd.f32 %v433_v12, %v105_v14 }
 0x257   :  { %v111_v18 = vmax.f32 %v109_v16, 0.0  ;;  %v112_v19 = vmax.f32 %v110_v17, 0.0 }
 0x259   :  { %v133_v21 = vand.u32 4294901760, %v111_v18  ;;  %v279_v22 = vand.u32 4294901760, %v112_v19 }
 0x25b   :  { %134 = vmatpush.msra.mxu0 %v133_v21  ;;  %210 = vmatpush.msra.mxu3 %v133_v21  ;;  %v160_v23 = vsub.f32 %v111_v18, %v133_v21  ;;  %v306_v24 = vsub.f32 %v112_v19, %v279_v22 }
 0x25c   :  { %140 = vmatmul.f32.vlgmr.msra.gmra.mxu0 %v139_v20  ;;  %214 = vmatmul.f32.vlgmr.msra.gmra.mxu3 %v137_v6 }
 0x25d   :  { %187 = vmatpush.msra.mxu2 %v160_v23  ;;  %v161_v25 = vand.u32 4294901760, %v160_v23  ;;  %v307_v26 = vand.u32 4294901760, %v306_v24 }
 0x25e   :  { %190 = vmatmul.f32.vlgmr.msra.gmra.mxu2 %v136_v59 }
 0x25f   :  { %280 = vmatpush.msrb.mxu2 %v279_v22  ;;  %236 = vmatpush.msrb.mxu0 %v161_v25  ;;  %v162_v28 = vsub.f32 %v160_v23, %v161_v25  ;;  %v308_v29 = vsub.f32 %v306_v24, %v307_v26 }
 0x261   :  { %382 = vmatpush.msra.mxu2 %v307_v26  ;;  %333 = vmatpush.msra.mxu0 %v306_v24  ;;  %v163_v30 = vand.u32 4294901760, %v162_v28  ;;  %v309_v32 = vand.u32 4294901760, %v308_v29 }
 0x263   :  { %164 = vmatpush.msra.mxu1 %v163_v30  ;;  %310 = vmatpush.msrb.mxu3 %v309_v32 }
 0x264   :  { %166 = vmatmul.f32.vlgmr.msra.gmra.mxu1 %v135_v54  ;;  %238 = vmatmul.f32.vlgmr.msrb.gmra.mxu0 %v135_v54 }
 0x265   :  { %404 = vmatpush.msra.mxu3 %v279_v22  ;;  %258 = vmatpush.msrb.mxu1 %v133_v21 }
 0x266   :  { %286 = vmatmul.f32.vlgmr.msrb.gmra.mxu2 %v139_v20  ;;  %312 = vmatmul.f32.vlgmr.msrb.gmra.mxu3 %v135_v54 }
 0x267   :  { %356 = vmatpush.msra.mxu1 %v279_v22 }
 0x26c   :  { %260 = vmatmul.f32.vlgmr.msrb.gmra.mxu1 %v135_v54  ;;  %336 = vmatmul.f32.vlgmr.msra.gmra.mxu0 %v136_v59 }
 0x26e   :  { %384 = vmatmul.f32.vlgmr.msra.gmra.mxu2 %v135_v54  ;;  %406 = vmatmul.f32.vlgmr.msra.gmra.mxu3 %v135_v54 }
 0x274   :  { %360 = vmatmul.f32.vlgmr.msra.gmra.mxu1 %v137_v6 }
 0x2d9   :  { %v141_v33 = vpop.f32.mrf.mxu0 }
 0x2da   :  { %v142_v34 = vadd.f32 %v141_v33, %v509_v27 }
 0x2df   :  { %v215_v35 = vpop.f32.mrf.mxu3 }
 0x2e1   :  { %v167_v36 = vpop.f32.mrf.mxu1  ;;  %v191_v37 = vpop.f32.mrf.mxu2 }
 0x2e2   :  { %v168_v38 = vadd.f32 %v167_v36, %v142_v34  ;;  %v239_v39 = vpop.f32.mrf.mxu0 }
 0x2e4   :  { %v192_v40 = vadd.f32 %v191_v37, %v168_v38 }
 0x2e6   :  { %v216_v41 = vadd.f32 %v215_v35, %v192_v40 }
 0x2e8   :  { %v240_v42 = vadd.f32 %v239_v39, %v216_v41 }
 0x2e9   :  { %v261_v43 = vpop.f32.mrf.mxu1  ;;  %v287_v44 = vpop.f32.mrf.mxu2 }
 0x2ea   :  { %v262_v45 = vadd.f32 %v261_v43, %v240_v42  ;;  %v288_v46 = vadd.f32 %v287_v44, %v516_v31  ;;  %v313_v47 = vpop.f32.mrf.mxu3  ;;  %v337_v50 = vpop.f32.mrf.mxu0 }
 0x2ec   :  { %v410_v48 = vadd.f32 %v262_v45, %v469_v0  ;;  %v314_v49 = vadd.f32 %v313_v47, %v288_v46 }
 0x2ee   :  { %v412_v51 = vmax.f32 %v410_v48, 0.0  ;;  %v338_v27 = vadd.f32 %v337_v50, %v314_v49 }
 0x2f0   :  { %414 = vst [vmem:[%s564_s3] sm:$0xff] %v412_v51 }
 0x2f1   :  { %v361_v52 = vpop.f32.mrf.mxu1  ;;  %v385_v53 = vpop.f32.mrf.mxu2 }
 0x2f2   :  { %v362_v54 = vadd.f32 %v361_v52, %v338_v27  ;;  %v407_v55 = vpop.f32.mrf.mxu3 }
 0x2f4   :  { %v386_v56 = vadd.f32 %v385_v53, %v362_v54 }
 0x2f6   :  { %v408_v57 = vadd.f32 %v407_v55, %v386_v56 }
 0x2f8   :  { %v411_v58 = vadd.f32 %v408_v57, %v477_v1 }
 0x2fa   :  { %v413_v31 = vmax.f32 %v411_v58, 0.0 }
 0x2fc   :  { %415 = vst [vmem:[%s564_s3 + $0x8] sm:$0xff] %v413_v31 }

</bundles_post_ra>
